<compile_context>
chip_gen: v7x
topology: tpu7x:2x2x1
jax: 0.10.0
libtpu: 0.0.40
codegen_flags: <defaults>
</compile_context>

<pallas_src>
import functools
import math

import jax
import jax.numpy as jnp
import numpy as np
from jax import lax
from jax.experimental import pallas as pl
from jax.experimental.pallas import tpu as pltpu


def _round_up(a, b):
    return (a + b - 1) // b * b


def _vmem_limit_bytes():
    # ~75% of physical VMEM: 48 MiB on v7x (64 MiB), 96 MiB on v5e/v6e (128 MiB).
    try:
        cap = pltpu.get_tpu_info().vmem_capacity_bytes
    except Exception:
        cap = 64 * 1024 * 1024  # conservative fallback (safe on every generation)
    return int(cap) * 3 // 4


def _pick_col_tile(total, target=512):
    """Largest multiple of 128 <= target that divides `total`; else the full width."""
    if total <= target or total % 128 != 0:
        return total
    best = total
    for t in range(128, target + 1, 128):
        if total % t == 0:
            best = t
    return best


# ---------------------------------------------------------------------------
# Kernel 1: per-channel [sum; sum-of-squares] for BatchNorm batch statistics.
# Rows >= valid_rows (pad rows or stale partial-tile rows) are masked to zero.
# ---------------------------------------------------------------------------
def bn_stats_kernel(x_ref, stat_ref, *, valid_rows):
    @pl.when(pl.program_id(0) == 0)
    def _():
        stat_ref[...] = jnp.zeros_like(stat_ref)

    tm = x_ref.shape[0]
    x = x_ref[...].astype(jnp.float32)
    rows = lax.broadcasted_iota(jnp.int32, x.shape, 0) + pl.program_id(0) * tm
    x = jnp.where(rows < valid_rows, x, 0.0)
    stat_ref[...] += jnp.concatenate(
        [jnp.sum(x, axis=0, keepdims=True),
         jnp.sum(x * x, axis=0, keepdims=True)], axis=0)


def bn_stats(x2d, *, tm, valid_rows, vmem_limit):
    Mp, H = x2d.shape
    kern = functools.partial(bn_stats_kernel, valid_rows=valid_rows)
    # TODO(synk): on v7x (2 TensorCores) split this reduction across cores with a leading
    # parallel axis producing per-core partial stats combined in the glue.
    return pl.pallas_call(
        kern,
        out_shape=jax.ShapeDtypeStruct((2, H), jnp.float32),
        grid_spec=pltpu.PrefetchScalarGridSpec(
            num_scalar_prefetch=0,
            grid=(pl.cdiv(Mp, tm),),
            in_specs=[pl.BlockSpec((tm, H), lambda i: (i, 0))],
            out_specs=pl.BlockSpec((2, H), lambda i: (0, 0)),
        ),
        compiler_params=pltpu.CompilerParams(
            dimension_semantics=("arbitrary",),
            vmem_limit_bytes=vmem_limit,
        ),
    )(x2d)


# ---------------------------------------------------------------------------
# Kernel 2: fused BN normalize (folded affine + sm_scale) + QKV projection.
# bf16 operands, fp32 accumulation, bf16 output; W column-tiled for v7x VMEM.
# ---------------------------------------------------------------------------
def qkv_kernel(x_ref, scale_ref, shift_ref, w_ref, o_ref):
    x = x_ref[...].astype(jnp.float32)
    xn = (x * scale_ref[...] + shift_ref[...]).astype(jnp.bfloat16)
    o_ref[...] = jnp.dot(xn, w_ref[...],
                         preferred_element_type=jnp.float32).astype(o_ref.dtype)


def qkv_project(x2d, scale, shift, w_qkv, *, tm, vmem_limit):
    Mp, H = x2d.shape
    H3 = w_qkv.shape[1]
    tn = _pick_col_tile(H3)
    const = lambda i, j: (0, 0)  # noqa: E731
    return pl.pallas_call(
        qkv_kernel,
        out_shape=jax.ShapeDtypeStruct((Mp, H3), jnp.bfloat16),
        grid_spec=pltpu.PrefetchScalarGridSpec(
            num_scalar_prefetch=0,
            grid=(pl.cdiv(Mp, tm), H3 // tn),
            in_specs=[
                pl.BlockSpec((tm, H), lambda i, j: (i, 0)),  # x tile (rows)
                pl.BlockSpec((1, H), const),                 # folded BN scale
                pl.BlockSpec((1, H), const),                 # folded BN shift
                pl.BlockSpec((H, tn), lambda i, j: (0, j)),  # bf16 W_qkv column tile
            ],
            out_specs=pl.BlockSpec((tm, tn), lambda i, j: (i, j)),
        ),
        compiler_params=pltpu.CompilerParams(
            dimension_semantics=("parallel", "parallel"),
            vmem_limit_bytes=vmem_limit,
        ),
    )(x2d, scale, shift, w_qkv)


# ---------------------------------------------------------------------------
# Kernel 3: self-attention fused with the output projection.
# Grid = (batch, head); heads accumulate o_h @ W_out[h*hd:(h+1)*hd, :] into a
# lane-dense (N, H) fp32 scratch, stored once on the last head.
# ---------------------------------------------------------------------------
def attn_outproj_kernel(q_ref, k_ref, v_ref, wo_ref, o_ref, acc_ref, *, num_heads):
    h = pl.program_id(1)

    @pl.when(h == 0)
    def _():
        acc_ref[...] = jnp.zeros_like(acc_ref)

    q = q_ref[0]  # (N, hd) bf16 -- 1/sqrt(hd) already folded into W_qkv's q columns
    k = k_ref[0]
    v = v_ref[0]
    # TODO(synk): for long sequences, tile the KV axis with an online-softmax (flash)
    # accumulator instead of materializing the full (N, N) fp32 score tile.
    s = lax.dot_general(q, k, (((1,), (1,)), ((), ())),
                        preferred_element_type=jnp.float32)        # (N, N) fp32
    m = jnp.max(s, axis=-1, keepdims=True)
    p = jnp.exp(s - m)                                              # fp32
    inv = pl.reciprocal(jnp.sum(p, axis=-1, keepdims=True), approx=True)
    o = jnp.dot(p.astype(jnp.bfloat16), v, preferred_element_type=jnp.float32)  # (N, hd)
    o = o * inv                                                     # normalize small tile
    acc_ref[...] += jnp.dot(o.astype(jnp.bfloat16), wo_ref[...],
                            preferred_element_type=jnp.float32)     # (N, H)

    @pl.when(h == num_heads - 1)
    def _():
        o_ref[0] = acc_ref[...].astype(o_ref.dtype)


def attention_outproj(qh, kh, vh, w_out, *, batch, num_heads, out_dtype, vmem_limit):
    BH, N, hd = qh.shape
    H = w_out.shape[1]
    kern = functools.partial(attn_outproj_kernel, num_heads=num_heads)
    qkv_spec = pl.BlockSpec((1, N, hd), lambda b, h: (b * num_heads + h, 0, 0))
    # TODO(synk): on v6e, batch several heads per grid step (block (G, N, hd) + batched einsum)
    # to amortize the per-grid-step overhead when hd << 256.
    return pl.pallas_call(
        kern,
        out_shape=jax.ShapeDtypeStruct((batch, N, H), out_dtype),
        grid_spec=pltpu.PrefetchScalarGridSpec(
            num_scalar_prefetch=0,
            grid=(batch, num_heads),
            in_specs=[qkv_spec, qkv_spec, qkv_spec,
                      pl.BlockSpec((hd, H), lambda b, h: (h, 0))],   # W_out row slice per head
            out_specs=pl.BlockSpec((1, N, H), lambda b, h: (b, 0, 0)),
            scratch_shapes=[pltpu.VMEM((N, H), jnp.float32)],
        ),
        compiler_params=pltpu.CompilerParams(
            dimension_semantics=("parallel", "arbitrary"),
            vmem_limit_bytes=vmem_limit,
        ),
    )(qh, kh, vh, w_out)


# ---------------------------------------------------------------------------
# MHABlock forward (glue in plain JAX; hot path in the three Pallas kernels).
# ---------------------------------------------------------------------------
@functools.partial(jax.jit, static_argnames=("num_heads", "tm", "eps"))
def mha_block_forward(hidden_states, params, *, num_heads, tm=512, eps=1e-5):
    B, N, H = hidden_states.shape
    assert H % num_heads == 0, "hidden_size must be divisible by num_heads"
    hd = H // num_heads
    assert hd % 8 == 0, "head_dim must be a multiple of 8 for the per-head W_out block"
    M = B * N
    x2d = hidden_states.reshape(M, H)

    # Pad rows only up to the 8-row sublane quantum (usually a no-op). Partial tail tiles
    # of the row grid are masked in bn_stats; projection tail writes are clamped by Pallas.
    Mp = _round_up(M, 8)
    x_work = x2d if Mp == M else jnp.pad(x2d, ((0, Mp - M), (0, 0)))
    tm_rows = min(tm, Mp)
    vmem_limit = _vmem_limit_bytes()

    # 1) BatchNorm1d training-mode batch statistics (biased variance).
    stats = bn_stats(x_work, tm=tm_rows, valid_rows=M, vmem_limit=vmem_limit)
    mean = stats[0:1, :] / M
    var = jnp.maximum(stats[1:2, :] / M - mean * mean, 0.0)  # clamp guards fp32 cancellation
    invstd = lax.rsqrt(var + eps)
    scale = params["gamma"] * invstd              # folded BN affine: xn = x*scale + shift
    shift = params["beta"] - mean * scale

    # 2) Fused normalize + QKV projection; 1/sqrt(hd) folded into the q columns of W_qkv.
    sm_scale = 1.0 / math.sqrt(hd)
    col_scale = jnp.concatenate([jnp.full((H,), sm_scale, jnp.float32),
                                 jnp.ones((2 * H,), jnp.float32)])
    w_qkv_bf16 = (params["w_qkv"] * col_scale[None, :]).astype(jnp.bfloat16)
    qkv = qkv_project(x_work, scale, shift, w_qkv_bf16, tm=tm_rows,
                      vmem_limit=vmem_limit)[:M]                      # (M, 3H) bf16

    # Head split (bf16, so half the transpose traffic of the previous version).
    # TODO(synk): when hd % 128 == 0, read q/k/v straight from the (M, 3H) buffer with
    # BlockSpec column indexing instead of these XLA transposes.
    def to_heads(t):
        return (t.reshape(B, N, num_heads, hd)
                 .transpose(0, 2, 1, 3)
                 .reshape(B * num_heads, N, hd))

    q, k, v = jnp.split(qkv, 3, axis=1)
    qh, kh, vh = to_heads(q), to_heads(k), to_heads(v)

    # 3) Attention fused with the output projection (lane-dense (N, H) output).
    w_out_bf16 = params["w_out"].astype(jnp.bfloat16)
    return attention_outproj(qh, kh, vh, w_out_bf16, batch=B, num_heads=num_heads,
                             out_dtype=hidden_states.dtype, vmem_limit=vmem_limit)


def make_params(key, hidden_size, num_heads):
    del num_heads  # shapes don't depend on head count
    k1, k2 = jax.random.split(key)
    # nn.MultiheadAttention: in_proj_weight (3H, H) xavier_uniform; out_proj.weight (H, H).
    lim_in = float(np.sqrt(6.0 / (hidden_size + 3 * hidden_size)))
    in_proj = jax.random.uniform(k1, (3 * hidden_size, hidden_size),
                                 jnp.float32, -lim_in, lim_in)
    lim_out = 1.0 / float(np.sqrt(hidden_size))
    out_w = jax.random.uniform(k2, (hidden_size, hidden_size),
                               jnp.float32, -lim_out, lim_out)
    return {
        "w_qkv": in_proj.T,                           # (H, 3H): kernel computes xn @ W
        "w_out": out_w.T,                             # (H, H)
        "gamma": jnp.ones((1, hidden_size), jnp.float32),   # BatchNorm1d weight
        "beta": jnp.zeros((1, hidden_size), jnp.float32),   # BatchNorm1d bias
    }


def mha_block_reference(hidden_states, params, num_heads, eps=1e-5):
    """Pure-JAX fp32 reference matching the PyTorch forward."""
    B, N, H = hidden_states.shape
    hd = H // num_heads
    x = hidden_states.reshape(B * N, H)
    mean = jnp.mean(x, axis=0, keepdims=True)
    var = jnp.mean((x - mean) ** 2, axis=0, keepdims=True)
    xn = (x - mean) / jnp.sqrt(var + eps) * params["gamma"] + params["beta"]
    qkv = xn @ params["w_qkv"]
    q, k, v = jnp.split(qkv, 3, axis=1)

    def heads(t):
        return t.reshape(B, N, num_heads, hd).transpose(0, 2, 1, 3)

    qh, kh, vh = heads(q), heads(k), heads(v)
    s = jnp.einsum("bhqd,bhkd->bhqk", qh, kh) / np.sqrt(hd)
    p = jax.nn.softmax(s, axis=-1)
    o = jnp.einsum("bhqk,bhkd->bhqd", p, vh)
    o = o.transpose(0, 2, 1, 3).reshape(B * N, H)
    out = o @ params["w_out"]
    return out.reshape(B, N, H)


if __name__ == "__main__":
    B, N, H, NUM_HEADS = 2, 8, 32, 4  # batch, seq, hidden_size, num_heads
    key = jax.random.PRNGKey(0)
    kx, kp = jax.random.split(key)
    hidden_states = jax.random.normal(kx, (B, N, H), jnp.float32)
    params = make_params(kp, H, NUM_HEADS)

    out = mha_block_forward(hidden_states, params, num_heads=NUM_HEADS)
    out = jax.block_until_ready(out)

    ref = mha_block_reference(hidden_states, params, NUM_HEADS)
    # bf16 matmul operands (fp32 accumulation) -> relaxed tolerance vs the fp32 reference.
    np.testing.assert_allclose(np.asarray(out), np.asarray(ref), rtol=3e-2, atol=1e-2)
    print("KERNEL_OK")
</pallas_src>

<mosaic_0001>
module attributes {stable_mosaic.version = 11 : i64} {
  func.func @qkv_kernel(%arg0: i32, %arg1: i32, %arg2: memref<16x32xf32, #tpu.memory_space<vmem>>, %arg3: memref<1x32xf32, #tpu.memory_space<vmem>>, %arg4: memref<1x32xf32, #tpu.memory_space<vmem>>, %arg5: memref<32x96xbf16, #tpu.memory_space<vmem>>, %arg6: memref<16x96xbf16, #tpu.memory_space<vmem>>) attributes {dimension_semantics = [#tpu.dimension_semantics<parallel>, #tpu.dimension_semantics<parallel>], iteration_bounds = array<i64: 1, 1>, scalar_prefetch = 0 : i64, scratch_operands = 0 : i64, tpu.core_type = #tpu.core_type<tc>, window_params = [{transform_indices = @transform_0, window_bounds = array<i64: 16, 32>}, {pipeline_mode = #tpu.pipeline_mode<synchronous>, transform_indices = @transform_1, window_bounds = array<i64: 1, 32>}, {pipeline_mode = #tpu.pipeline_mode<synchronous>, transform_indices = @transform_2, window_bounds = array<i64: 1, 32>}, {transform_indices = @transform_3, window_bounds = array<i64: 32, 96>}, {transform_indices = @transform_4, window_bounds = array<i64: 16, 96>}]} {
    %c0 = arith.constant 0 : index
    %c0_0 = arith.constant 0 : index
    %0 = vector.load %arg2[%c0, %c0_0] : memref<16x32xf32, #tpu.memory_space<vmem>>, vector<16x32xf32>
    %c0_1 = arith.constant 0 : index
    %c0_2 = arith.constant 0 : index
    %1 = vector.load %arg3[%c0_1, %c0_2] : memref<1x32xf32, #tpu.memory_space<vmem>>, vector<1x32xf32>
    %2 = vector.broadcast %1 : vector<1x32xf32> to vector<16x32xf32>
    %3 = arith.mulf %0, %2 : vector<16x32xf32>
    %c0_3 = arith.constant 0 : index
    %c0_4 = arith.constant 0 : index
    %4 = vector.load %arg4[%c0_3, %c0_4] : memref<1x32xf32, #tpu.memory_space<vmem>>, vector<1x32xf32>
    %5 = vector.broadcast %4 : vector<1x32xf32> to vector<16x32xf32>
    %6 = arith.addf %3, %5 : vector<16x32xf32>
    %7 = arith.truncf %6 : vector<16x32xf32> to vector<16x32xbf16>
    %c0_5 = arith.constant 0 : index
    %c0_6 = arith.constant 0 : index
    %8 = vector.load %arg5[%c0_5, %c0_6] : memref<32x96xbf16, #tpu.memory_space<vmem>>, vector<32x96xbf16>
    %cst = arith.constant dense<0.000000e+00> : vector<16x96xf32>
    %9 = tpu.matmul %7, %8, %cst {dimension_numbers = #tpu.dot_dimension_numbers<[1], [0], [0], [1], [0, 0, 1, 1], [], []>} : vector<16x32xbf16>, vector<32x96xbf16>, vector<16x96xf32> -> vector<16x96xf32>
    %10 = arith.truncf %9 : vector<16x96xf32> to vector<16x96xbf16>
    %c0_7 = arith.constant 0 : index
    %c0_8 = arith.constant 0 : index
    %11 = vector.load %arg6[%c0_7, %c0_8] : memref<16x96xbf16, #tpu.memory_space<vmem>>, vector<16x96xbf16>
    tpu.vector_store %arg6[%c0_7, %c0_8], %10 {strides = array<i32>} : memref<16x96xbf16, #tpu.memory_space<vmem>>, vector<16x96xbf16>,
    return
  }
  func.func @transform_0(%arg0: i32, %arg1: i32) -> (i32, i32) {
    %c0_i32 = arith.constant 0 : i32
    %c0_i32_0 = arith.constant 0 : i32
    return %arg0, %c0_i32 : i32, i32
  }
  func.func @transform_1(%arg0: i32, %arg1: i32) -> (i32, i32) {
    %c0_i32 = arith.constant 0 : i32
    %c0_i32_0 = arith.constant 0 : i32
    %c0_i32_1 = arith.constant 0 : i32
    return %c0_i32, %c0_i32_0 : i32, i32
  }
  func.func @transform_2(%arg0: i32, %arg1: i32) -> (i32, i32) {
    %c0_i32 = arith.constant 0 : i32
    %c0_i32_0 = arith.constant 0 : i32
    %c0_i32_1 = arith.constant 0 : i32
    return %c0_i32, %c0_i32_0 : i32, i32
  }
  func.func @transform_3(%arg0: i32, %arg1: i32) -> (i32, i32) {
    %c0_i32 = arith.constant 0 : i32
    %c0_i32_0 = arith.constant 0 : i32
    return %c0_i32, %arg1 : i32, i32
  }
  func.func @transform_4(%arg0: i32, %arg1: i32) -> (i32, i32) {
    %c0_i32 = arith.constant 0 : i32
    return %arg0, %arg1 : i32, i32
  }
}

module attributes {stable_mosaic.version = 11 : i64} {
  func.func @bn_stats_kernel(%arg0: i32, %arg1: memref<16x32xf32, #tpu.memory_space<vmem>>, %arg2: memref<2x32xf32, #tpu.memory_space<vmem>>) attributes {dimension_semantics = [#tpu.dimension_semantics<arbitrary>], iteration_bounds = array<i64: 1>, scalar_prefetch = 0 : i64, scratch_operands = 0 : i64, tpu.core_type = #tpu.core_type<tc>, window_params = [{transform_indices = @transform_0, window_bounds = array<i64: 16, 32>}, {pipeline_mode = #tpu.pipeline_mode<synchronous>, transform_indices = @transform_1, window_bounds = array<i64: 2, 32>}]} {
    %c0_i32 = arith.constant 0 : i32
    %0 = arith.cmpi eq, %arg0, %c0_i32 : i32
    %1 = arith.extui %0 : i1 to i32
    %c0_i32_0 = arith.constant 0 : i32
    %2 = arith.cmpi ne, %1, %c0_i32_0 : i32
    scf.if %2 {
      %cst_9 = arith.constant 0.000000e+00 : f32
      %21 = vector.broadcast %cst_9 : f32 to vector<2x32xf32>
      %c0_10 = arith.constant 0 : index
      %c0_11 = arith.constant 0 : index
      %22 = vector.load %arg2[%c0_10, %c0_11] : memref<2x32xf32, #tpu.memory_space<vmem>>, vector<2x32xf32>
      tpu.vector_store %arg2[%c0_10, %c0_11], %21 {strides = array<i32>} : memref<2x32xf32, #tpu.memory_space<vmem>>, vector<2x32xf32>,
    } else {
    }
    %c0 = arith.constant 0 : index
    %c0_1 = arith.constant 0 : index
    %3 = vector.load %arg1[%c0, %c0_1] : memref<16x32xf32, #tpu.memory_space<vmem>>, vector<16x32xf32>
    %4 = tpu.iota {dimensions = array<i32: 0>} : vector<16x32xi32>
    %c16_i32 = arith.constant 16 : i32
    %5 = arith.muli %arg0, %c16_i32 : i32
    %6 = vector.broadcast %5 : i32 to vector<16x32xi32>
    %7 = arith.addi %4, %6 : vector<16x32xi32>
    %c16_i32_2 = arith.constant 16 : i32
    %8 = vector.broadcast %c16_i32_2 : i32 to vector<16x32xi32>
    %9 = arith.cmpi slt, %7, %8 : vector<16x32xi32>
    %cst = arith.constant 0.000000e+00 : f32
    %10 = vector.broadcast %cst : f32 to vector<16x32xf32>
    %11 = arith.select %9, %3, %10 : vector<16x32xi1>, vector<16x32xf32>
    %c0_3 = arith.constant 0 : index
    %c0_4 = arith.constant 0 : index
    %12 = vector.load %arg2[%c0_3, %c0_4] : memref<2x32xf32, #tpu.memory_space<vmem>>, vector<2x32xf32>
    %cst_5 = arith.constant dense<0.000000e+00> : vector<32xf32>
    %13 = vector.multi_reduction <add>, %11, %cst_5 [0] : vector<16x32xf32> to vector<32xf32>
    %14 = vector.shape_cast %13 : vector<32xf32> to vector<1x32xf32>
    %15 = arith.mulf %11, %11 : vector<16x32xf32>
    %cst_6 = arith.constant dense<0.000000e+00> : vector<32xf32>
    %16 = vector.multi_reduction <add>, %15, %cst_6 [0] : vector<16x32xf32> to vector<32xf32>
    %17 = vector.shape_cast %16 : vector<32xf32> to vector<1x32xf32>
    %18 = tpu.concatenate %14, %17 in 0 : vector<1x32xf32>, vector<1x32xf32> -> vector<2x32xf32>
    %19 = arith.addf %12, %18 : vector<2x32xf32>
    %c0_7 = arith.constant 0 : index
    %c0_8 = arith.constant 0 : index
    %20 = vector.load %arg2[%c0_7, %c0_8] : memref<2x32xf32, #tpu.memory_space<vmem>>, vector<2x32xf32>
    tpu.vector_store %arg2[%c0_7, %c0_8], %19 {strides = array<i32>} : memref<2x32xf32, #tpu.memory_space<vmem>>, vector<2x32xf32>,
    return
  }
  func.func @transform_0(%arg0: i32) -> (i32, i32) {
    %c0_i32 = arith.constant 0 : i32
    %c0_i32_0 = arith.constant 0 : i32
    return %arg0, %c0_i32 : i32, i32
  }
  func.func @transform_1(%arg0: i32) -> (i32, i32) {
    %c0_i32 = arith.constant 0 : i32
    %c0_i32_0 = arith.constant 0 : i32
    %c0_i32_1 = arith.constant 0 : i32
    return %c0_i32, %c0_i32_0 : i32, i32
  }
}

module attributes {stable_mosaic.version = 11 : i64} {
  func.func @attn_outproj_kernel(%arg0: i32, %arg1: i32, %arg2: memref<1x8x8xbf16, #tpu.memory_space<vmem>>, %arg3: memref<1x8x8xbf16, #tpu.memory_space<vmem>>, %arg4: memref<1x8x8xbf16, #tpu.memory_space<vmem>>, %arg5: memref<8x32xbf16, #tpu.memory_space<vmem>>, %arg6: memref<1x8x32xf32, #tpu.memory_space<vmem>>, %arg7: memref<8x32xf32, #tpu.memory_space<vmem>>) attributes {dimension_semantics = [#tpu.dimension_semantics<parallel>, #tpu.dimension_semantics<arbitrary>], iteration_bounds = array<i64: 2, 4>, scalar_prefetch = 0 : i64, scratch_operands = 1 : i64, tpu.core_type = #tpu.core_type<tc>, window_params = [{transform_indices = @transform_0, window_bounds = array<i64: 1, 8, 8>}, {transform_indices = @transform_1, window_bounds = array<i64: 1, 8, 8>}, {transform_indices = @transform_2, window_bounds = array<i64: 1, 8, 8>}, {transform_indices = @transform_3, window_bounds = array<i64: 8, 32>}, {transform_indices = @transform_4, window_bounds = array<i64: 1, 8, 32>}]} {
    %c0_i32 = arith.constant 0 : i32
    %0 = arith.cmpi eq, %arg1, %c0_i32 : i32
    %1 = arith.extui %0 : i1 to i32
    %c0_i32_0 = arith.constant 0 : i32
    %2 = arith.cmpi ne, %1, %c0_i32_0 : i32
    scf.if %2 {
      %cst_20 = arith.constant 0.000000e+00 : f32
      %31 = vector.broadcast %cst_20 : f32 to vector<8x32xf32>
      %c0_21 = arith.constant 0 : index
      %c0_22 = arith.constant 0 : index
      %32 = vector.load %arg7[%c0_21, %c0_22] : memref<8x32xf32, #tpu.memory_space<vmem>>, vector<8x32xf32>
      tpu.vector_store %arg7[%c0_21, %c0_22], %31 {strides = array<i32>} : memref<8x32xf32, #tpu.memory_space<vmem>>, vector<8x32xf32>,
    } else {
    }
    %c0 = arith.constant 0 : index
    %c0_1 = arith.constant 0 : index
    %c0_2 = arith.constant 0 : index
    %3 = vector.load %arg2[%c0, %c0_1, %c0_2] : memref<1x8x8xbf16, #tpu.memory_space<vmem>>, vector<1x8x8xbf16>
    %4 = vector.shape_cast %3 : vector<1x8x8xbf16> to vector<8x8xbf16>
    %c0_3 = arith.constant 0 : index
    %c0_4 = arith.constant 0 : index
    %c0_5 = arith.constant 0 : index
    %5 = vector.load %arg3[%c0_3, %c0_4, %c0_5] : memref<1x8x8xbf16, #tpu.memory_space<vmem>>, vector<1x8x8xbf16>
    %6 = vector.shape_cast %5 : vector<1x8x8xbf16> to vector<8x8xbf16>
    %c0_6 = arith.constant 0 : index
    %c0_7 = arith.constant 0 : index
    %c0_8 = arith.constant 0 : index
    %7 = vector.load %arg4[%c0_6, %c0_7, %c0_8] : memref<1x8x8xbf16, #tpu.memory_space<vmem>>, vector<1x8x8xbf16>
    %8 = vector.shape_cast %7 : vector<1x8x8xbf16> to vector<8x8xbf16>
    %cst = arith.constant dense<0.000000e+00> : vector<8x8xf32>
    %9 = tpu.matmul %4, %6, %cst {dimension_numbers = #tpu.dot_dimension_numbers<[1], [1], [0], [0], [0, 0, 1, 0], [], []>} : vector<8x8xbf16>, vector<8x8xbf16>, vector<8x8xf32> -> vector<8x8xf32>
    %cst_9 = arith.constant dense<0xFF800000> : vector<8xf32>
    %10 = vector.multi_reduction <maximumf>, %9, %cst_9 [1] : vector<8x8xf32> to vector<8xf32>
    %11 = vector.shape_cast %10 : vector<8xf32> to vector<8x1xf32>
    %12 = vector.broadcast %11 : vector<8x1xf32> to vector<8x8xf32>
    %13 = arith.subf %9, %12 : vector<8x8xf32>
    %14 = math.exp %13 : vector<8x8xf32>
    %cst_10 = arith.constant dense<0.000000e+00> : vector<8xf32>
    %15 = vector.multi_reduction <add>, %14, %cst_10 [1] : vector<8x8xf32> to vector<8xf32>
    %16 = vector.shape_cast %15 : vector<8xf32> to vector<8x1xf32>
    %17 = tpu.reciprocal %16 {approx = true} : vector<8x1xf32> -> vector<8x1xf32>
    %18 = arith.truncf %14 : vector<8x8xf32> to vector<8x8xbf16>
    %cst_11 = arith.constant dense<0.000000e+00> : vector<8x8xf32>
    %19 = tpu.matmul %18, %8, %cst_11 {dimension_numbers = #tpu.dot_dimension_numbers<[1], [0], [0], [1], [0, 0, 1, 1], [], []>} : vector<8x8xbf16>, vector<8x8xbf16>, vector<8x8xf32> -> vector<8x8xf32>
    %20 = vector.broadcast %17 : vector<8x1xf32> to vector<8x8xf32>
    %21 = arith.mulf %19, %20 : vector<8x8xf32>
    %c0_12 = arith.constant 0 : index
    %c0_13 = arith.constant 0 : index
    %22 = vector.load %arg7[%c0_12, %c0_13] : memref<8x32xf32, #tpu.memory_space<vmem>>, vector<8x32xf32>
    %23 = arith.truncf %21 : vector<8x8xf32> to vector<8x8xbf16>
    %c0_14 = arith.constant 0 : index
    %c0_15 = arith.constant 0 : index
    %24 = vector.load %arg5[%c0_14, %c0_15] : memref<8x32xbf16, #tpu.memory_space<vmem>>, vector<8x32xbf16>
    %cst_16 = arith.constant dense<0.000000e+00> : vector<8x32xf32>
    %25 = tpu.matmul %23, %24, %cst_16 {dimension_numbers = #tpu.dot_dimension_numbers<[1], [0], [0], [1], [0, 0, 1, 1], [], []>} : vector<8x8xbf16>, vector<8x32xbf16>, vector<8x32xf32> -> vector<8x32xf32>
    %26 = arith.addf %22, %25 : vector<8x32xf32>
    %c0_17 = arith.constant 0 : index
    %c0_18 = arith.constant 0 : index
    %27 = vector.load %arg7[%c0_17, %c0_18] : memref<8x32xf32, #tpu.memory_space<vmem>>, vector<8x32xf32>
    tpu.vector_store %arg7[%c0_17, %c0_18], %26 {strides = array<i32>} : memref<8x32xf32, #tpu.memory_space<vmem>>, vector<8x32xf32>,
    %c3_i32 = arith.constant 3 : i32
    %28 = arith.cmpi eq, %arg1, %c3_i32 : i32
    %29 = arith.extui %28 : i1 to i32
    %c0_i32_19 = arith.constant 0 : i32
    %30 = arith.cmpi ne, %29, %c0_i32_19 : i32
    scf.if %30 {
      %c0_20 = arith.constant 0 : index
      %c0_21 = arith.constant 0 : index
      %31 = vector.load %arg7[%c0_20, %c0_21] : memref<8x32xf32, #tpu.memory_space<vmem>>, vector<8x32xf32>
      %c0_22 = arith.constant 0 : index
      %c0_23 = arith.constant 0 : index
      %c0_24 = arith.constant 0 : index
      %32 = vector.load %arg6[%c0_22, %c0_23, %c0_24] : memref<1x8x32xf32, #tpu.memory_space<vmem>>, vector<1x8x32xf32>
      %33 = vector.shape_cast %32 : vector<1x8x32xf32> to vector<8x32xf32>
      %34 = vector.shape_cast %31 : vector<8x32xf32> to vector<1x8x32xf32>
      tpu.vector_store %arg6[%c0_22, %c0_23, %c0_24], %34 {strides = array<i32>} : memref<1x8x32xf32, #tpu.memory_space<vmem>>, vector<1x8x32xf32>,
    } else {
    }
    return
  }
  func.func @transform_0(%arg0: i32, %arg1: i32) -> (i32, i32, i32) {
    %c4_i32 = arith.constant 4 : i32
    %0 = arith.muli %arg0, %c4_i32 : i32
    %1 = arith.addi %0, %arg1 : i32
    %c0_i32 = arith.constant 0 : i32
    %c0_i32_0 = arith.constant 0 : i32
    %c0_i32_1 = arith.constant 0 : i32
    return %1, %c0_i32, %c0_i32_0 : i32, i32, i32
  }
  func.func @transform_1(%arg0: i32, %arg1: i32) -> (i32, i32, i32) {
    %c4_i32 = arith.constant 4 : i32
    %0 = arith.muli %arg0, %c4_i32 : i32
    %1 = arith.addi %0, %arg1 : i32
    %c0_i32 = arith.constant 0 : i32
    %c0_i32_0 = arith.constant 0 : i32
    %c0_i32_1 = arith.constant 0 : i32
    return %1, %c0_i32, %c0_i32_0 : i32, i32, i32
  }
  func.func @transform_2(%arg0: i32, %arg1: i32) -> (i32, i32, i32) {
    %c4_i32 = arith.constant 4 : i32
    %0 = arith.muli %arg0, %c4_i32 : i32
    %1 = arith.addi %0, %arg1 : i32
    %c0_i32 = arith.constant 0 : i32
    %c0_i32_0 = arith.constant 0 : i32
    %c0_i32_1 = arith.constant 0 : i32
    return %1, %c0_i32, %c0_i32_0 : i32, i32, i32
  }
  func.func @transform_3(%arg0: i32, %arg1: i32) -> (i32, i32) {
    %c0_i32 = arith.constant 0 : i32
    %c0_i32_0 = arith.constant 0 : i32
    return %arg1, %c0_i32 : i32, i32
  }
  func.func @transform_4(%arg0: i32, %arg1: i32) -> (i32, i32, i32) {
    %c0_i32 = arith.constant 0 : i32
    %c0_i32_0 = arith.constant 0 : i32
    %c0_i32_1 = arith.constant 0 : i32
    return %arg0, %c0_i32, %c0_i32_0 : i32, i32, i32
  }
}

</mosaic_0001>

<bundles_post_ra>
// kernel: mha_block_forward.3
= control target key start
LH: loop header
LB: loop body
LE: loop exit
PB: predicated region body
PF: predicated region fallthrough
CT: control target
= control target key end

     0   :  { %vm12_vm0 = vcmask 254976   ;;  %vm28_vm1 = vcmask 261120   ;;  %v59_v0 = vmov 0.0   ;;  %vm49_vm2 = vcmask 1040384   ;;  %s87_s0 = inlined_call_operand.vmem [shape: f32[16,32], index: 0, kind: input, shape index: {}]   ;;  %s88_s1 = inlined_call_operand.vmem [shape: f32[2,32], index: 1, kind: output, shape index: {}]  }
   0x1   :  { %13 = vst.msk [vmem:[%s88_s1] sm:$0x3] %vm12_vm0, %v59_v0  ;;  %v14_v1 = vld [vmem:[%s87_s0] sm:$0xff]  ;;  %v15_v2 = vld [vmem:[%s87_s0 + $0x8] sm:$0xff] }
   0x2   :  { %v29_v3 = vsel %vm28_vm1, %v14_v1, 0.0  ;;  %v30_v4 = vsel %vm28_vm1, %v15_v2, 0.0  ;;  %v38_v5 = vmul.f32 %v14_v1, %v14_v1  ;;  %v39_v6 = vmul.f32 %v15_v2, %v15_v2 }
   0x3   :  { %v31_v7 = vadd.f32 %v30_v4, %v29_v3 }
   0x4   :  { %v40_v8 = vsel %vm28_vm1, %v38_v5, 0.0  ;;  %v41_v9 = vsel %vm28_vm1, %v39_v6, 0.0 }
   0x5   :  { %v32_v10 = vrot.slane %v31_v7, 4  ;;  %v42_v11 = vadd.f32 %v41_v9, %v40_v8 }
   0x7   :  { %v33_v12 = vadd.f32 %v32_v10, %v31_v7  ;;  %v43_v13 = vrot.slane %v42_v11, 4 }
   0x8   :  { %v27_v22 = vld [vmem:[%s88_s1] sm:$0x3] }
   0x9   :  { %v34_v14 = vrot.slane %v33_v12, 2  ;;  %v44_v15 = vadd.f32 %v43_v13, %v42_v11 }
   0xb   :  { %v35_v16 = vadd.f32 %v34_v14, %v33_v12  ;;  %v45_v17 = vrot.slane %v44_v15, 2 }
   0xd   :  { %v36_v18 = vrot.slane %v35_v16, 1  ;;  %v46_v19 = vadd.f32 %v45_v17, %v44_v15 }
   0xf   :  { %v37_v20 = vadd.f32 %v36_v18, %v35_v16  ;;  %v47_v21 = vrot.slane %v46_v19, 1 }
  0x11   :  { %v48_v23 = vadd.f32 %v47_v21, %v46_v19 }
  0x13   :  { %v50_v24 = vsel %vm49_vm2, %v37_v20, %v48_v23 }
  0x14   :  { %v51_v25 = vadd.f32 %v50_v24, %v27_v22 }
  0x16   :  { %53 = vst.msk [vmem:[%s88_s1] sm:$0x3] %vm12_vm0, %v51_v25 }

// kernel: mha_block_forward.4
= control target key start
LH: loop header
LB: loop body
LE: loop exit
PB: predicated region body
PF: predicated region fallthrough
CT: control target
= control target key end

     0   :  { %v139_v0 = vmov 0.0   ;;  %vm140_vm0 = vmmov 0   ;;  %vm55_vm1 = vcmask 261120   ;;  %vm108_vm2 = vcmask 781312   ;;  %s190_s3 = inlined_call_operand.vmem [shape: bf16[32,96], index: 3, kind: input, shape index: {}]   ;;  %s191_s0 = inlined_call_operand.vmem [shape: f32[16,32], index: 0, kind: input, shape index: {}]   ;;  %s192_s1 = inlined_call_operand.vmem [shape: f32[1,32], index: 1, kind: input, shape index: {}]   ;;  %s193_s2 = inlined_call_operand.vmem [shape: f32[1,32], index: 2, kind: input, shape index: {}]   ;;  %s194_s4 = inlined_call_operand.vmem [shape: bf16[16,96], index: 4, kind: output, shape index: {}]  }
   0x1   :  { %127 = vmatprep.subr.bf16.mxu0 %v139_v0  ;;  %v137_v1 = vld [vmem:[%s190_s3] sm:$0xff]   ;;  %131 = vmatprep.mubr.msk.bf16.mxu0 %vm140_vm0, %v139_v0  ;;  %v138_v2 = vld [vmem:[%s190_s3 + $0x8] sm:$0xff]  }
   0x2   :  { %128 = vmatpush3.bf16.msra.mxu0 %v137_v1  ;;  %v18_v3 = vld [vmem:[%s191_s0] sm:$0xff]  ;;  %v19_v4 = vld [vmem:[%s191_s0 + $0x8] sm:$0xff] }
   0x3   :  { %v115_v5 = vld [vmem:[%s192_s1] ss:$0 sm:$0xff]  ;;  %129 = vmatprep.subr.bf16.mxu0 %v139_v0 }
   0x4   :  { %v27_v6 = vmul.f32 %v115_v5, %v18_v3  ;;  %v28_v7 = vmul.f32 %v115_v5, %v19_v4  ;;  %v116_v8 = vld [vmem:[%s193_s2] ss:$0 sm:$0xff] }
   0x6   :  { %v36_v9 = vadd.f32 %v116_v8, %v27_v6  ;;  %v37_v10 = vadd.f32 %v116_v8, %v28_v7  ;;  %130 = vmatpush3.bf16.msra.mxu0 %v138_v2 }
   0x8   :  { %v38_v11 = vpack.c.bf16 %v37_v10, %v36_v9 }
   0xa   :  { %132 = vmatmul.mubr.msk.bf16.vlgmr.msra.gmra.mrb[0].mxu0 %vm55_vm1, %v38_v11 }
  0xdd   :  { %v93_v12 = vpop.f32.mrb[0].mxu0 }
  0xde   :  { %v122_v13 = vpack.c.bf16 %v93_v12, %v93_v12  ;;  %v133_v14 = vpop.f32.mrb[1].mxu0 }
  0xdf   :  { %v96_v15 = vpop.f32.mrb[2].mxu0 }
  0xe0   :  { %109 = vst.msk [vmem:[%s194_s4] sm:$0xf] %vm108_vm2, %v122_v13  ;;  %v123_v16 = vpack.c.bf16 %v96_v15, %v96_v15  ;;  %v134_v17 = vpop.f32.mrb[3].mxu0 }
  0xe2   :  { %110 = vst.msk [vmem:[%s194_s4 + $0x4] sm:$0xf] %vm108_vm2, %v123_v16 }

// kernel: mha_block_forward.5
= control target key start
LH: loop header
LB: loop body
LE: loop exit
PB: predicated region body
PF: predicated region fallthrough
CT: control target
= control target key end

     0   :  { %9 = vsyncpa [#allocation4], 0  ;;  %s1014_s0 = inlined_call_operand.vmem [shape: bf16[8,8,8], index: 0, kind: input, shape index: {}]   ;;  %s1015_s1 = inlined_call_operand.vmem [shape: bf16[8,8,8], index: 1, kind: input, shape index: {}]   ;;  %s1016_s2 = inlined_call_operand.vmem [shape: bf16[8,8,8], index: 2, kind: input, shape index: {}]   ;;  %s1017_s3 = inlined_call_operand.vmem [shape: bf16[32,32], index: 3, kind: input, shape index: {}]   ;;  %s1018_s4 = inlined_call_operand.hbm [shape: f32[2,8,32], index: 4, kind: output, shape index: {}]  }
   0x1   :  { %11 = vsyncpa [#allocation4 + $0x1], 0  ;;  %s847_s15 = smov 0   ;;  %s849_s16 = smov 0  }
   0x2   :  { %s851_s17 = smov 0   ;;  %s853_s18 = smov 0  }
   0x3   :  { %s855_s19 = smov 0   ;;  %s857_s20 = smov 0  }
   0x4   :  { %s859_s21 = smov 0   ;;  %s861_s22 = smov 0  }
   0x5 LB: > { %1023 = sst [smem:[#allocation6_spill]] %s808_s20  ;;  %s592_s23 = sadd.s32 4294967295, %s816_s22   ;;  %s816_s22 = sphi %s861_s22, %s17_s22   ;;  %s812_s21 = sphi %s859_s21, %s1033_s21   ;;  %s808_s20 = sphi %s857_s20, %s1032_s20   ;;  %s804_s19 = sphi %s855_s19, %s1031_s19   ;;  %s800_s18 = sphi %s853_s18, %s1030_s18   ;;  %s796_s17 = sphi %s851_s17, %s1036_s17   ;;  %s792_s16 = sphi %s849_s16, %s1035_s16   ;;  %s788_s15 = sphi %s847_s15, %s1034_s15  }
   0x6   : > { %1024 = sst [smem:[#allocation7_spill]] %s812_s21  ;;  %s593_s24 = sadd.s32 4294967294, %s816_s22  }
   0x7   : > { %s26_s25 = sadd.s32 1, %s808_s20  ;;  %s29_s26 = sadd.s32 1, %s812_s21 }
   0x8   : > { %p27_p0 = scmp.ge.s32.totalorder %s26_s25, 4  ;;  %p162_p1 = scmp.ne.s32.totalorder %s796_s17, %s792_s16 }
   0x9   : > { %p163_p2 = scmp.eq.s32.totalorder %s592_s23, 7  ;;  %p168_p4 = scmp.ne.s32.totalorder %s792_s16, %s788_s15 }
   0xa   : > { %s1038_s25 = smov (%p27_p0, %s26_s25), 0  ;;  %s1040_s26 = smov (!%p27_p0, %s29_s26), %s812_s21 }
   0xb   : > { %1025 = sst [smem:[#allocation8_spill]] %s1038_s25  ;;  %p896_p3 = por %p163_p2, %p162_p1 }
   0xc   : > { %p31_p5 = scmp.ge.s32.totalorder %s1040_s26, 2  ;;  %p169_p6 = scmp.eq.s32.totalorder %s593_s24, 7 }
   0xd   : > { %p602_p7 = scmp.ge.s32.totalorder %s816_s22, 1  ;;  %p227_p8 = scmp.lt.s32.totalorder %s816_s22, 9 }
   0xe   : > { %s1042_s26 = smov (%p31_p5, %s1040_s26), 0  ;;  %p906_p9 = por %p169_p6, %p168_p4 }
   0xf   : > { %1027 = sst [smem:[#allocation9_spill]] %s1042_s26  ;;  %p228_p10 = pnand %p602_p7, %p227_p8 }
  0x10   : > { %s149_s29 = ssub.s32 %s812_s21, %s1042_s26  ;;  %s152_s30 = sadd.s32 1, %s796_s17 }
  0x11   : > { %p150_p11 = scmp.eq.s32.totalorder %s149_s29, 0  ;;  %231 = sbr.rel (%p228_p10) target bundleno = 876 (0x36c), region = 36 }
  0x12   : > { %s1019_s6 = sand.u32 (!%p228_p10), 1, %s792_s16   ;;  %s604_s7 = sshll.u32 (!%p228_p10), %s804_s19, 2 }
  0x13   : > { %s914_s5 = scalar_select %p150_p11, %s796_s17, %s152_s30  }
  0x14   : > { %s920_s8 = sshll.u32 (!%p228_p10), %s1019_s6, 3  ;;  %s271_s9 = sadd.s32 (!%p228_p10), %s800_s18, %s604_s7 }
  0x15   : > { %p272_p12 = scmp.lt.s32.totalorder (!%p228_p10), %s271_s9, 7  ;;  %p294_p13 = scmp.lt.s32.totalorder (!%p228_p10), %s800_s18, 3 }
  0x16   : > { %s269_s20 = scalar_lea.vmem (!%p228_p10), [#allocation3], %s920_s8  ;;  %p611_p0 = scmp.ne.s32.totalorder (!%p228_p10), %s800_s18, 0 }
  0x18   : > { %s1044_s9 = smov (!%p272_p12, %s271_s9), 7  ;;  %302 = sbr.rel (%p611_p0) target bundleno = 31 (0x1f), region = 40 }
  0x19   : > { %s295_s10 = scalar_select %p294_p13, %s800_s18, 3 }
  0x1a   : > { %s925_s11 = sshll.u32 %s1044_s9, 2  ;;  %vm303_vm0 = vcmask (!%p611_p0), 261120   ;;  %v818_v0 = vmov (!%p611_p0), 0.0  }
  0x1b   : > { %s275_s14 = scalar_lea.vmem %s1014_s0, %s925_s11  ;;  %s283_s29 = scalar_lea.vmem %s1015_s1, %s925_s11  ;;  %304 = vst.msk [vmem:[#allocation2] sm:$0xff] (!%p611_p0), %vm303_vm0, %v818_v0 }
  0x1c   : > { %s291_s7 = scalar_lea.vmem %s1016_s2, %s925_s11  ;;  %s610_s26 = sshll.u32 %s295_s10, 2 }
  0x1d   : > { %s942_s9 = scalar_lea.vmem %s1017_s3, %s610_s26 }
  0x1f PF: > { %v306_v1 = vld [vmem:[%s283_s29] sm:$0xf]  ;;  %vm308_vm1 = vcmask 64512   ;;  %v819_v2 = vmov 0.0   ;;  %vm820_vm2 = vmmov 0   ;;  %vm369_vm3 = vcmask 1043456  }
  0x20   : > { %626 = vmatprep.subr.bf16.mxu0 %v819_v2  ;;  %v313_v3 = vsel %vm308_vm1, %v306_v1, 0  ;;  %628 = vmatprep.mubr.msk.bf16.mxu0 %vm820_vm2, %v819_v2  ;;  %v305_v4 = vld [vmem:[%s275_s14] sm:$0xf]  ;;  %vm464_vm4 = vcmask 261120   ;;  %p615_p1 = scmp.ne.s32.totalorder %s800_s18, 3 }
  0x21   : > { %627 = vmatpush3.bf16.xpose.msra.mxu0 %v313_v3  ;;  %632 = vmatprep.subr.bf16.mxu1 %v819_v2  ;;  %v307_v10 = vld [vmem:[%s291_s7] sm:$0xf] }
  0x22   : > { %634 = vmatprep.mubr.msk.bf16.mxu1 %vm820_vm2, %v819_v2  ;;  %v371_v11 = vsel %vm369_vm3, %v307_v10, 0  ;;  %v416_v15 = vld [vmem:[%s942_s9] sm:$0xf] }
  0x23   : > { %633 = vmatpush3.bf16.msra.mxu1 %v371_v11  ;;  %v421_v17 = vsel %vm369_vm3, %v416_v15, 0  ;;  %v414_v28 = vld [vmem:[#allocation2] sm:$0xff] }
  0x24   : > { %638 = vmatprep.subr.bf16.mxu1 %v819_v2 }
  0x28   : > { %629 = vmatmul.mubr.msk.bf16.vlgmr.msra.gmra.mrb[0].mxu0 %vm308_vm1, %v305_v4 }
  0xfb   : > { %v349_v5 = vpop.f32.mrb[0].mxu0 }
  0xfc   : > { %v630_v6 = vpop.f32.mrb[1].mxu0  ;;  %v355_v7 = vsel %vm308_vm1, %v349_v5, -inf }
  0xfd   : > { %356 = vmax.xlane.f32.xlu0 %v355_v7  ;;  %v352_v8 = vpop.f32.mrb[2].mxu0 }
  0xfe   : > { %v631_v9 = vpop.f32.mrb[3].mxu0 }
 0x18a   : > { %v357_v12 = vpop.xlane.xlu0 %356 }
 0x18b   : > { %v358_v13 = vsub.f32 %v349_v5, %v357_v12 }
 0x18d   : > { %v359_v14 = vmul.f32 1.442695, %v358_v13 }
 0x18f   : > { %718 = vpow2.f32 %v359_v14 }
 0x199   : > { %v719_v16 = vpop.eup %718 }
 0x19a   : > { %v361_v18 = vsel %vm308_vm1, %v719_v16, 0.0  ;;  %v365_v19 = vpack.c.bf16 %v719_v16, %v719_v16 }
 0x19b   : > { %362 = vadd.xlane.f32.xlu0 %v361_v18 }
 0x19c   : > { %635 = vmatmul.mubr.msk.bf16.vlgmr.msra.gmra.mrb[0].mxu1 %vm308_vm1, %v365_v19 }
 0x19d   : > { %639 = vmatpush3.bf16.msra.mxu1 %v421_v17  ;;  %640 = vmatprep.mubr.msk.bf16.mxu1 %vm820_vm2, %v819_v2 }
 0x228   : > { %v363_v20 = vpop.xlane.xlu0 %362 }
 0x229   : > { %720 = vrcp.f32 %v363_v20 }
 0x233   : > { %v721_v21 = vpop.eup %720 }
 0x26f   : > { %v407_v22 = vpop.f32.mrb[0].mxu1 }
 0x270   : > { %v413_v23 = vmul.f32 %v721_v21, %v407_v22  ;;  %v636_v24 = vpop.f32.mrb[1].mxu1 }
 0x271   : > { %v410_v25 = vpop.f32.mrb[2].mxu1 }
 0x272   : > { %v415_v26 = vpack.c.bf16 %v413_v23, %v413_v23  ;;  %v637_v27 = vpop.f32.mrb[3].mxu1 }
 0x274   : > { %641 = vmatmul.mubr.msk.bf16.vlgmr.msra.gmra.mrb[4].mxu1 %vm308_vm1, %v415_v26 }
 0x344   : > { %469 = sbr.rel (%p615_p1) target bundleno = 851 (0x353), region = 44 }
 0x347   : > { %v457_v29 = vpop.f32.mrb[4].mxu1 }
 0x348   : > { %v463_v30 = vadd.f32 %v457_v29, %v414_v28  ;;  %v642_v31 = vpop.f32.mrb[5].mxu1 }
 0x349   : > { %v460_v32 = vpop.f32.mrb[6].mxu1 }
 0x34a   : > { %465 = vst.msk [vmem:[#allocation2] sm:$0xff] %vm464_vm4, %v463_v30  ;;  %v643_v33 = vpop.f32.mrb[7].mxu1 }
 0x351   : > { %v470_v34 = vld [vmem:[#allocation2] sm:$0xff] }
 0x352   : > { %471 = vst.msk [vmem:[%s269_s20] sm:$0xff] %vm464_vm4, %v470_v34 }
 0x353 PF: > { %s617_s21 = sshll.u32 %s804_s19, 7  ;;  %s486_s10 = sshll.u32 %s269_s20, 4  ;;  %s487_s10 = int_to_ptr.vmem [resolvable:$true] %s486_s10 }
 0x354   : > { %s963_s6 = scalar_lea.hbm %s1018_s4, %s617_s21  ;;  %s1029_s18 = sand.u32 1, %s792_s16  }
 0x355   : > { %s473_s11 = scalar_lea.sflag [#allocation4], %s1029_s18  ;;  %s722_s12 = scalar_lea.vmem %s487_s10, 128 }
 0x356   : > { %p723_p2 = scmp.ne.s32.totalorder %s487_s10, %s722_s12  ;;  %s821_s13 = smov [#allocation3]  }
 0x357   : > { %s726_s14 = sshll.u32 %s821_s13, 4  ;;  %s727_s14 = int_to_ptr.vmem [resolvable:$false] %s726_s14 }
 0x358   : > { %p724_p4 = pnand %p723_p2, %p896_p3  ;;  %s728_s23 = scalar_lea.vmem %s727_s14, 256 }
 0x359   : > { %p729_p6 = scmp.lt.s32.totalorder %s487_s10, %s727_s14  ;;  %p730_p7 = scmp.lt.s32.totalorder %s728_s23, %s722_s12 }
 0x35a   : > { %p725_p5 = pneg %p724_p4 }
 0x35b   : > { %p731_p8 = por %p730_p7, %p729_p6 }
 0x35d   : > { %p732_p10 = pnand %p731_p8, %p725_p5 }
 0x35f   : > { %735 = shalt.err (!%p732_p10)
}
 0x360   : > { %s736_s19 = scalar_lea.hbm %s963_s6, 128  ;;  %s740_s24 = scalar_lea.hbm %s1018_s4, 256 }
 0x361   : > { %p737_p11 = scmp.ne.s32.totalorder %s963_s6, %s736_s19  ;;  %p741_p0 = scmp.lt.u32.totalorder %s963_s6, %s1018_s4 }
 0x362   : > { %p742_p1 = scmp.lt.u32.totalorder %s740_s24, %s736_s19  ;;  %p744_p4 = scmp.lt.u32.totalorder %s736_s19, %s963_s6 }
 0x363   : > { %p738_p12 = pnand %p737_p11, %p896_p3 }
 0x364   : > { %p743_p2 = por %p742_p1, %p741_p0 }
 0x365   : > { %p739_p13 = pneg %p738_p12 }
 0x366   : > { %p745_p5 = por %p744_p4, %p743_p2 }
 0x368   : > { %p746_p6 = pnand %p745_p5, %p739_p13 }
 0x36a   : > { %749 = shalt.err (!%p746_p6)
}
 0x36b   : > { %644 = dma.vmem_to_hbm [thread:$0]  (%p896_p3), %s487_s10, 128, %s963_s6, %s473_s11  }
 0x36c PF: > { %p650_p7 = scmp.ge.s32.totalorder %s816_s22, 2  ;;  %s498_s7 = sand.u32 1, %s788_s15  }
 0x36d   : > { %s499_s9 = scalar_lea.sflag [#allocation4], %s498_s7 }
 0x36e   : > { %p647_p8 = pnand %p650_p7, %p906_p9 }
 0x370   : > { %783 = dma.done.wait (!%p647_p8), %s499_s9, 128  }
 0x371   : > { %785 = vsyncadd (!%p647_p8), %s499_s9, 4294967168  ;;  %s17_s22 = sadd.s32 1, %s816_s22   ;;  %s1030_s18 = sld [smem:[#allocation6_spill]] }
 0x372   : > { %p14_p10 = scmp.ge.s32.totalorder %s17_s22, 10   ;;  %s1031_s19 = sld [smem:[#allocation7_spill]] }
 0x373   : > { %s1032_s20 = sld [smem:[#allocation8_spill]]  ;;  %s1033_s21 = sld [smem:[#allocation9_spill]] }
 0x374   : > { %s1034_s15 = smov %s792_s16  ;;  %s1035_s16 = smov %s796_s17 }
 0x375   : > { %s1036_s17 = smov %s914_s5  ;;  %16 = sbr.rel (!%p14_p10) target bundleno = 5 (0x5), region = 88 }
 0x37c   :  { %504 = vsyncpa [#allocation4], 1 }
 0x37d   :  { %506 = vsyncpa [#allocation4 + $0x1], 1 }

</bundles_post_ra>
